<compile_context>
chip_gen: v6e
topology: v6e:2x2x1
jax: 0.10.0
libtpu: 0.0.40
codegen_flags: <defaults>
</compile_context>

<pallas_src>
import functools

import jax
import jax.numpy as jnp
from jax.experimental import pallas as pl
from jax.experimental.pallas import tpu as pltpu


# ----------------------------- Pallas kernel ------------------------------- #

def fused_proj_ln_kernel(x_ref, w_ref, b_ref, g_ref, bt_ref, o_ref,
                         *, eps, inv_d, mxu_dtype):
    """o = LayerNorm(x @ w + b) over the last dim.

    x: (TM, T), w: (T, D), b/g/bt: (1, D) -> o: (TM, D).
    MXU feeds optionally cast to `mxu_dtype` in-vreg; accumulation and all
    LayerNorm math stay f32 (single-pass sum / sum-of-squares statistics).
    """
    x = x_ref[...]
    if mxu_dtype is not None and x.dtype != mxu_dtype:
        x = x.astype(mxu_dtype)                     # in-kernel cast: no HBM pass
    acc = jnp.dot(x, w_ref[...], preferred_element_type=jnp.float32)
    y = acc + b_ref[...].astype(jnp.float32)        # (TM, D) f32

    # One-pass statistics: var = E[y^2] - mean^2 (post-bias activations are
    # well-conditioned, so the cancellation is benign in f32).
    s1 = jnp.sum(y, axis=-1, keepdims=True)
    s2 = jnp.sum(y * y, axis=-1, keepdims=True)
    mean = s1 * inv_d
    var = jnp.maximum(s2 * inv_d - mean * mean, 0.0)

    xhat = (y - mean) * jax.lax.rsqrt(var + eps)
    out = xhat * g_ref[...].astype(jnp.float32) + bt_ref[...].astype(jnp.float32)
    o_ref[...] = out.astype(o_ref.dtype)


# ------------------------------ JAX wrappers -------------------------------- #

def _round_up(x, m):
    return ((x + m - 1) // m) * m


def _plan_tiles(M, T, D, x_bytes, o_bytes, w_bytes):
    """Pick the token-row tile TM and a vmem_limit, generation-aware."""
    try:
        vmem_cap = int(pltpu.get_tpu_info().vmem_capacity_bytes)
    except Exception:
        vmem_cap = 64 << 20                         # conservative: assume v7x
    big_vmem = vmem_cap >= (96 << 20)               # v5e / v6e: 128 MiB parts
    target_rows = 2048 if big_vmem else 1024
    stream_budget = (64 << 20) if big_vmem else (24 << 20)
    limit_cap = (100 << 20) if big_vmem else (48 << 20)

    MXU_M = 256                                     # MXU M-tile (also /128 on v5e)

    def footprint(t):
        streams = 2 * t * (T * x_bytes + D * o_bytes)     # double-buffered x / out tiles
        resident = 2 * (T * D * w_bytes + 3 * D * 4)      # weight + LN vectors (worst case 2x)
        scratch = 3 * t * D * 4                           # f32 acc / y / xhat temporaries
        return streams + resident + scratch

    if M <= MXU_M:
        tm = M                                      # single tile; block == full dim is legal
    else:
        tm = min(target_rows, (M // MXU_M) * MXU_M)
        while tm > MXU_M and footprint(tm) > stream_budget:
            tm = max((tm // 2) // MXU_M * MXU_M, MXU_M)
        # Give v7x's two TensorCores at least one full tile each.
        if pl.cdiv(M, tm) < 2:
            tm = _round_up(pl.cdiv(M, 2), MXU_M)

    vmem_limit = int(min(max(int(1.25 * footprint(tm)), 32 << 20), limit_cap))
    return tm, vmem_limit


def fused_proj_layernorm(x2d, w, b, gamma, beta, *, eps=1e-5,
                         mxu_dtype=None, out_dtype=None):
    """x2d: (M, T), w: (T, D), b/gamma/beta: (D,) -> LayerNorm(x2d @ w + b): (M, D).

    NOTE: for best store density D should be a multiple of 128 (true for real
    ViT embed dims); the kernel is still correct otherwise (masked stores).
    """
    M, T = x2d.shape
    D = w.shape[1]
    out_dtype = x2d.dtype if out_dtype is None else jnp.dtype(out_dtype)

    if mxu_dtype is not None:
        # One-time tiny cast of the VMEM-resident weight; the streamed x tile
        # is cast in-kernel at the dot so it makes no extra HBM pass.
        w = w.astype(mxu_dtype)

    x_bytes = x2d.dtype.itemsize
    w_bytes = w.dtype.itemsize
    o_bytes = out_dtype.itemsize

    tm, vmem_limit = _plan_tiles(M, T, D, x_bytes, o_bytes, w_bytes)
    n_tiles = pl.cdiv(M, tm)

    b2, g2, bt2 = b.reshape(1, D), gamma.reshape(1, D), beta.reshape(1, D)

    kernel = functools.partial(fused_proj_ln_kernel, eps=eps, inv_d=1.0 / D,
                               mxu_dtype=mxu_dtype)

    def build(single_buffer_consts):
        const_kwargs = ({"pipeline_mode": pl.Buffered(1)}
                        if single_buffer_consts else {})
        grid_spec = pltpu.PrefetchScalarGridSpec(
            num_scalar_prefetch=0,
            grid=(n_tiles,),
            in_specs=[
                pl.BlockSpec((tm, T), lambda i: (i, 0)),                    # token tile: streams
                pl.BlockSpec((T, D), lambda i: (0, 0), **const_kwargs),     # weight: resident
                pl.BlockSpec((1, D), lambda i: (0, 0), **const_kwargs),     # bias
                pl.BlockSpec((1, D), lambda i: (0, 0), **const_kwargs),     # ln gamma
                pl.BlockSpec((1, D), lambda i: (0, 0), **const_kwargs),     # ln beta
            ],
            out_specs=pl.BlockSpec((tm, D), lambda i: (i, 0)),
        )
        return pl.pallas_call(
            kernel,
            out_shape=jax.ShapeDtypeStruct((M, D), out_dtype),
            grid_spec=grid_spec,
            compiler_params=pltpu.CompilerParams(
                dimension_semantics=("parallel",),      # token tiles independent
                vmem_limit_bytes=vmem_limit),
        )

    try:
        return build(True)(x2d, w, b2, g2, bt2)
    except Exception:
        # Fallback if this JAX build rejects pl.Buffered(1) on constant operands.
        return build(False)(x2d, w, b2, g2, bt2)


def _layernorm_rows(x, gamma, beta, eps=1e-5):
    """Plain-JAX row-wise LayerNorm for the tiny cls rows."""
    x = x.astype(jnp.float32)
    mean = jnp.mean(x, axis=-1, keepdims=True)
    var = jnp.mean(jnp.square(x - mean), axis=-1, keepdims=True)
    return (x - mean) * jax.lax.rsqrt(var + eps) * gamma + beta


# ---------------------------- Module equivalent ----------------------------- #

def init_vit_patch_embedder_params(key, embed_dim, patch_size, channels=3,
                                   compute_grad=False, num_cls_tokens=1):
    token_dim = (channels + 1 + int(compute_grad)) * patch_size ** 2
    k_w, k_b, k_cls = jax.random.split(key, 3)
    # nn.Linear default init: uniform(-1/sqrt(fan_in), 1/sqrt(fan_in))
    bound = 1.0 / jnp.sqrt(jnp.float32(token_dim))
    w = jax.random.uniform(k_w, (token_dim, embed_dim), jnp.float32, -bound, bound)
    b = jax.random.uniform(k_b, (embed_dim,), jnp.float32, -bound, bound)
    cls_token = 1e-4 * jax.random.normal(k_cls, (num_cls_tokens, embed_dim),
                                         jnp.float32)
    gamma = jnp.ones((embed_dim,), jnp.float32)
    beta = jnp.zeros((embed_dim,), jnp.float32)
    return dict(w=w, b=b, cls_token=cls_token, ln_gamma=gamma, ln_beta=beta,
                token_dim=token_dim, embed_dim=embed_dim,
                num_cls_tokens=num_cls_tokens)


def vit_patch_embedder_forward(params, fV, seg, byx, nV, *,
                               mxu_dtype=None, out_dtype=None):
    """Mirrors ViTPatchEmbedder.forward for a DPXExtractorResult = (fV, seg, byx, nV)."""
    B, H, W = seg.shape
    T = params["token_dim"]
    nC = params["num_cls_tokens"]
    D = params["embed_dim"]
    assert nV % B == 0, f"Error in num total patches nV % B == {nV % B}"

    x2d = fV.reshape(-1, T)                        # (B*N, T)
    M = x2d.shape[0]
    N = M // B

    # Fused Linear + pre-LayerNorm over the big token stream (single HBM pass).
    proj_n = fused_proj_layernorm(x2d, params["w"], params["b"],
                                  params["ln_gamma"], params["ln_beta"],
                                  mxu_dtype=mxu_dtype, out_dtype=out_dtype)  # (M, D)
    proj_n = proj_n.reshape(B, N, D)

    # cls tokens: LayerNorm is row-wise, so normalizing the (nC, D) cls rows
    # separately (tiny, plain JAX) is exactly equivalent to the PyTorch order
    # (concat first, then LayerNorm over the whole sequence).
    cls_n = _layernorm_rows(params["cls_token"], params["ln_gamma"],
                            params["ln_beta"]).astype(proj_n.dtype)
    cls_n = jnp.broadcast_to(cls_n.reshape(1, nC, D), (B, nC, D))

    # TODO(synk): writing token tiles straight into the (B, nC+N, D) slab at a
    # +nC row offset (input_output_aliases + element-offset out index_map) would
    # drop this concat's extra HBM round trip, but needs non-8-aligned output
    # row offsets; kept as XLA glue for robustness.
    tokens = jnp.concatenate([cls_n, proj_n], axis=1)              # (B, nC+N, D)

    amask = jnp.ones((B, nC + N), dtype=jnp.bool_)
    return tokens, seg, amask


# Pure-JAX reference for verification.
def _ref_forward(params, fV, seg, byx, nV):
    B, H, W = seg.shape
    T, nC, D = params["token_dim"], params["num_cls_tokens"], params["embed_dim"]
    proj = fV.reshape(B, -1, T) @ params["w"] + params["b"]
    cls = jnp.broadcast_to(params["cls_token"].reshape(1, nC, D), (B, nC, D))
    tokens = jnp.concatenate([cls, proj], axis=1)
    mean = jnp.mean(tokens, axis=-1, keepdims=True)
    var = jnp.mean(jnp.square(tokens - mean), axis=-1, keepdims=True)
    xhat = (tokens - mean) / jnp.sqrt(var + 1e-5)
    normed = xhat * params["ln_gamma"] + params["ln_beta"]
    amask = jnp.ones(tokens.shape[:2], dtype=jnp.bool_)
    return normed, seg, amask


if __name__ == "__main__":
    # Small synthetic config: embed_dim=128 (lane-dense stores), patch_size=4,
    # channels=3, compute_grad=False -> token_dim = (3+1)*16 = 64.
    embed_dim, patch_size, channels = 128, 4, 3
    B, H, W = 2, 16, 16
    n_patches_per_img = (H // patch_size) * (W // patch_size)   # 16
    nV = B * n_patches_per_img                                  # 32

    key = jax.random.PRNGKey(0)
    k_params, k_fv, k_seg, k_byx = jax.random.split(key, 4)
    params = init_vit_patch_embedder_params(k_params, embed_dim, patch_size,
                                            channels=channels)
    T = params["token_dim"]

    fV = jax.random.normal(k_fv, (nV, T), jnp.float32)
    seg = jax.random.randint(k_seg, (B, H, W), 0, nV).astype(jnp.int32)
    byx = jax.random.randint(k_byx, (nV, 3), 0, H).astype(jnp.int32)

    ref_out, ref_seg, ref_amask = _ref_forward(params, fV, seg, byx, nV)

    # 1) Exact-semantics path (f32 MXU feeds, f32 output).
    out, seg_out, amask = vit_patch_embedder_forward(params, fV, seg, byx, nV)
    jax.block_until_ready(out)
    jax.block_until_ready(amask)

    assert out.shape == (B, 1 + n_patches_per_img, embed_dim)
    assert amask.shape == (B, 1 + n_patches_per_img) and amask.dtype == jnp.bool_
    assert jnp.allclose(out, ref_out, atol=2e-4, rtol=2e-4)
    assert (seg_out == ref_seg).all()
    assert bool(amask.all()) and bool(ref_amask.all())

    # 2) bf16 MXU-feed + bf16 output path (v6e/v7x peak-throughput config);
    #    accumulation / LayerNorm stay f32 inside the kernel.
    out_bf16, _, _ = vit_patch_embedder_forward(params, fV, seg, byx, nV,
                                                mxu_dtype=jnp.bfloat16,
                                                out_dtype=jnp.bfloat16)
    jax.block_until_ready(out_bf16)
    assert out_bf16.dtype == jnp.bfloat16
    diff = jnp.abs(out_bf16.astype(jnp.float32) - ref_out)
    assert bool(jnp.isfinite(out_bf16.astype(jnp.float32)).all())
    assert float(jnp.max(diff)) < 0.25   # loose: bf16 feeds on normalized outputs

    print("KERNEL_OK")
</pallas_src>

<mosaic_0001>
module attributes {stable_mosaic.version = 11 : i64} {
  func.func @fused_proj_ln_kernel(%arg0: i32, %arg1: memref<32x64xf32, #tpu.memory_space<vmem>>, %arg2: memref<64x128xf32, #tpu.memory_space<vmem>>, %arg3: memref<1x128xf32, #tpu.memory_space<vmem>>, %arg4: memref<1x128xf32, #tpu.memory_space<vmem>>, %arg5: memref<1x128xf32, #tpu.memory_space<vmem>>, %arg6: memref<32x128xf32, #tpu.memory_space<vmem>>) attributes {dimension_semantics = [#tpu.dimension_semantics<parallel>], iteration_bounds = array<i64: 1>, scalar_prefetch = 0 : i64, scratch_operands = 0 : i64, tpu.core_type = #tpu.core_type<tc>, window_params = [{transform_indices = @transform_0, window_bounds = array<i64: 32, 64>}, {pipeline_mode = #tpu.pipeline_mode<synchronous>, transform_indices = @transform_1, window_bounds = array<i64: 64, 128>}, {pipeline_mode = #tpu.pipeline_mode<synchronous>, transform_indices = @transform_2, window_bounds = array<i64: 1, 128>}, {pipeline_mode = #tpu.pipeline_mode<synchronous>, transform_indices = @transform_3, window_bounds = array<i64: 1, 128>}, {pipeline_mode = #tpu.pipeline_mode<synchronous>, transform_indices = @transform_4, window_bounds = array<i64: 1, 128>}, {transform_indices = @transform_5, window_bounds = array<i64: 32, 128>}]} {
    %c0 = arith.constant 0 : index
    %c0_0 = arith.constant 0 : index
    %0 = vector.load %arg1[%c0, %c0_0] : memref<32x64xf32, #tpu.memory_space<vmem>>, vector<32x64xf32>
    %c0_1 = arith.constant 0 : index
    %c0_2 = arith.constant 0 : index
    %1 = vector.load %arg2[%c0_1, %c0_2] : memref<64x128xf32, #tpu.memory_space<vmem>>, vector<64x128xf32>
    %cst = arith.constant dense<0.000000e+00> : vector<32x128xf32>
    %2 = tpu.matmul %0, %1, %cst {dimension_numbers = #tpu.dot_dimension_numbers<[1], [0], [0], [1], [0, 0, 1, 1], [], []>} : vector<32x64xf32>, vector<64x128xf32>, vector<32x128xf32> -> vector<32x128xf32>
    %c0_3 = arith.constant 0 : index
    %c0_4 = arith.constant 0 : index
    %3 = vector.load %arg3[%c0_3, %c0_4] : memref<1x128xf32, #tpu.memory_space<vmem>>, vector<1x128xf32>
    %4 = vector.broadcast %3 : vector<1x128xf32> to vector<32x128xf32>
    %5 = arith.addf %2, %4 : vector<32x128xf32>
    %cst_5 = arith.constant dense<0.000000e+00> : vector<32xf32>
    %6 = vector.multi_reduction <add>, %5, %cst_5 [1] : vector<32x128xf32> to vector<32xf32>
    %7 = vector.shape_cast %6 : vector<32xf32> to vector<32x1xf32>
    %8 = arith.mulf %5, %5 : vector<32x128xf32>
    %cst_6 = arith.constant dense<0.000000e+00> : vector<32xf32>
    %9 = vector.multi_reduction <add>, %8, %cst_6 [1] : vector<32x128xf32> to vector<32xf32>
    %10 = vector.shape_cast %9 : vector<32xf32> to vector<32x1xf32>
    %cst_7 = arith.constant 7.812500e-03 : f32
    %11 = vector.broadcast %cst_7 : f32 to vector<32x1xf32>
    %12 = arith.mulf %7, %11 : vector<32x1xf32>
    %cst_8 = arith.constant 7.812500e-03 : f32
    %13 = vector.broadcast %cst_8 : f32 to vector<32x1xf32>
    %14 = arith.mulf %10, %13 : vector<32x1xf32>
    %15 = arith.mulf %12, %12 : vector<32x1xf32>
    %16 = arith.subf %14, %15 : vector<32x1xf32>
    %cst_9 = arith.constant 0.000000e+00 : f32
    %17 = vector.broadcast %cst_9 : f32 to vector<32x1xf32>
    %18 = arith.maximumf %16, %17 : vector<32x1xf32>
    %19 = vector.broadcast %12 : vector<32x1xf32> to vector<32x128xf32>
    %20 = arith.subf %5, %19 : vector<32x128xf32>
    %cst_10 = arith.constant 9.99999974E-6 : f32
    %21 = vector.broadcast %cst_10 : f32 to vector<32x1xf32>
    %22 = arith.addf %18, %21 : vector<32x1xf32>
    %23 = math.rsqrt %22 : vector<32x1xf32>
    %24 = vector.broadcast %23 : vector<32x1xf32> to vector<32x128xf32>
    %25 = arith.mulf %20, %24 : vector<32x128xf32>
    %c0_11 = arith.constant 0 : index
    %c0_12 = arith.constant 0 : index
    %26 = vector.load %arg4[%c0_11, %c0_12] : memref<1x128xf32, #tpu.memory_space<vmem>>, vector<1x128xf32>
    %27 = vector.broadcast %26 : vector<1x128xf32> to vector<32x128xf32>
    %28 = arith.mulf %25, %27 : vector<32x128xf32>
    %c0_13 = arith.constant 0 : index
    %c0_14 = arith.constant 0 : index
    %29 = vector.load %arg5[%c0_13, %c0_14] : memref<1x128xf32, #tpu.memory_space<vmem>>, vector<1x128xf32>
    %30 = vector.broadcast %29 : vector<1x128xf32> to vector<32x128xf32>
    %31 = arith.addf %28, %30 : vector<32x128xf32>
    %c0_15 = arith.constant 0 : index
    %c0_16 = arith.constant 0 : index
    %32 = vector.load %arg6[%c0_15, %c0_16] : memref<32x128xf32, #tpu.memory_space<vmem>>, vector<32x128xf32>
    tpu.vector_store %arg6[%c0_15, %c0_16], %31 {strides = array<i32>} : memref<32x128xf32, #tpu.memory_space<vmem>>, vector<32x128xf32>,
    return
  }
  func.func @transform_0(%arg0: i32) -> (i32, i32) {
    %c0_i32 = arith.constant 0 : i32
    %c0_i32_0 = arith.constant 0 : i32
    return %arg0, %c0_i32 : i32, i32
  }
  func.func @transform_1(%arg0: i32) -> (i32, i32) {
    %c0_i32 = arith.constant 0 : i32
    %c0_i32_0 = arith.constant 0 : i32
    %c0_i32_1 = arith.constant 0 : i32
    return %c0_i32, %c0_i32_0 : i32, i32
  }
  func.func @transform_2(%arg0: i32) -> (i32, i32) {
    %c0_i32 = arith.constant 0 : i32
    %c0_i32_0 = arith.constant 0 : i32
    %c0_i32_1 = arith.constant 0 : i32
    return %c0_i32, %c0_i32_0 : i32, i32
  }
  func.func @transform_3(%arg0: i32) -> (i32, i32) {
    %c0_i32 = arith.constant 0 : i32
    %c0_i32_0 = arith.constant 0 : i32
    %c0_i32_1 = arith.constant 0 : i32
    return %c0_i32, %c0_i32_0 : i32, i32
  }
  func.func @transform_4(%arg0: i32) -> (i32, i32) {
    %c0_i32 = arith.constant 0 : i32
    %c0_i32_0 = arith.constant 0 : i32
    %c0_i32_1 = arith.constant 0 : i32
    return %c0_i32, %c0_i32_0 : i32, i32
  }
  func.func @transform_5(%arg0: i32) -> (i32, i32) {
    %c0_i32 = arith.constant 0 : i32
    %c0_i32_0 = arith.constant 0 : i32
    return %arg0, %c0_i32 : i32, i32
  }
}

module attributes {stable_mosaic.version = 11 : i64} {
  func.func @fused_proj_ln_kernel(%arg0: i32, %arg1: memref<32x64xf32, #tpu.memory_space<vmem>>, %arg2: memref<64x128xf32, #tpu.memory_space<vmem>>, %arg3: memref<1x128xf32, #tpu.memory_space<vmem>>, %arg4: memref<1x128xf32, #tpu.memory_space<vmem>>, %arg5: memref<1x128xf32, #tpu.memory_space<vmem>>, %arg6: memref<32x128xf32, #tpu.memory_space<vmem>>) attributes {dimension_semantics = [#tpu.dimension_semantics<parallel>], iteration_bounds = array<i64: 1>, scalar_prefetch = 0 : i64, scratch_operands = 0 : i64, tpu.core_type = #tpu.core_type<tc>, window_params = [{transform_indices = @transform_0, window_bounds = array<i64: 32, 64>}, {pipeline_mode = #tpu.pipeline_mode<synchronous>, transform_indices = @transform_1, window_bounds = array<i64: 64, 128>}, {pipeline_mode = #tpu.pipeline_mode<synchronous>, transform_indices = @transform_2, window_bounds = array<i64: 1, 128>}, {pipeline_mode = #tpu.pipeline_mode<synchronous>, transform_indices = @transform_3, window_bounds = array<i64: 1, 128>}, {pipeline_mode = #tpu.pipeline_mode<synchronous>, transform_indices = @transform_4, window_bounds = array<i64: 1, 128>}, {transform_indices = @transform_5, window_bounds = array<i64: 32, 128>}]} {
    %c0 = arith.constant 0 : index
    %c0_0 = arith.constant 0 : index
    %0 = vector.load %arg1[%c0, %c0_0] : memref<32x64xf32, #tpu.memory_space<vmem>>, vector<32x64xf32>
    %c0_1 = arith.constant 0 : index
    %c0_2 = arith.constant 0 : index
    %1 = vector.load %arg2[%c0_1, %c0_2] : memref<64x128xf32, #tpu.memory_space<vmem>>, vector<64x128xf32>
    %cst = arith.constant dense<0.000000e+00> : vector<32x128xf32>
    %2 = tpu.matmul %0, %1, %cst {dimension_numbers = #tpu.dot_dimension_numbers<[1], [0], [0], [1], [0, 0, 1, 1], [], []>} : vector<32x64xf32>, vector<64x128xf32>, vector<32x128xf32> -> vector<32x128xf32>
    %c0_3 = arith.constant 0 : index
    %c0_4 = arith.constant 0 : index
    %3 = vector.load %arg3[%c0_3, %c0_4] : memref<1x128xf32, #tpu.memory_space<vmem>>, vector<1x128xf32>
    %4 = vector.broadcast %3 : vector<1x128xf32> to vector<32x128xf32>
    %5 = arith.addf %2, %4 : vector<32x128xf32>
    %cst_5 = arith.constant dense<0.000000e+00> : vector<32xf32>
    %6 = vector.multi_reduction <add>, %5, %cst_5 [1] : vector<32x128xf32> to vector<32xf32>
    %7 = vector.shape_cast %6 : vector<32xf32> to vector<32x1xf32>
    %8 = arith.mulf %5, %5 : vector<32x128xf32>
    %cst_6 = arith.constant dense<0.000000e+00> : vector<32xf32>
    %9 = vector.multi_reduction <add>, %8, %cst_6 [1] : vector<32x128xf32> to vector<32xf32>
    %10 = vector.shape_cast %9 : vector<32xf32> to vector<32x1xf32>
    %cst_7 = arith.constant 7.812500e-03 : f32
    %11 = vector.broadcast %cst_7 : f32 to vector<32x1xf32>
    %12 = arith.mulf %7, %11 : vector<32x1xf32>
    %cst_8 = arith.constant 7.812500e-03 : f32
    %13 = vector.broadcast %cst_8 : f32 to vector<32x1xf32>
    %14 = arith.mulf %10, %13 : vector<32x1xf32>
    %15 = arith.mulf %12, %12 : vector<32x1xf32>
    %16 = arith.subf %14, %15 : vector<32x1xf32>
    %cst_9 = arith.constant 0.000000e+00 : f32
    %17 = vector.broadcast %cst_9 : f32 to vector<32x1xf32>
    %18 = arith.maximumf %16, %17 : vector<32x1xf32>
    %19 = vector.broadcast %12 : vector<32x1xf32> to vector<32x128xf32>
    %20 = arith.subf %5, %19 : vector<32x128xf32>
    %cst_10 = arith.constant 9.99999974E-6 : f32
    %21 = vector.broadcast %cst_10 : f32 to vector<32x1xf32>
    %22 = arith.addf %18, %21 : vector<32x1xf32>
    %23 = math.rsqrt %22 : vector<32x1xf32>
    %24 = vector.broadcast %23 : vector<32x1xf32> to vector<32x128xf32>
    %25 = arith.mulf %20, %24 : vector<32x128xf32>
    %c0_11 = arith.constant 0 : index
    %c0_12 = arith.constant 0 : index
    %26 = vector.load %arg4[%c0_11, %c0_12] : memref<1x128xf32, #tpu.memory_space<vmem>>, vector<1x128xf32>
    %27 = vector.broadcast %26 : vector<1x128xf32> to vector<32x128xf32>
    %28 = arith.mulf %25, %27 : vector<32x128xf32>
    %c0_13 = arith.constant 0 : index
    %c0_14 = arith.constant 0 : index
    %29 = vector.load %arg5[%c0_13, %c0_14] : memref<1x128xf32, #tpu.memory_space<vmem>>, vector<1x128xf32>
    %30 = vector.broadcast %29 : vector<1x128xf32> to vector<32x128xf32>
    %31 = arith.addf %28, %30 : vector<32x128xf32>
    %c0_15 = arith.constant 0 : index
    %c0_16 = arith.constant 0 : index
    %32 = vector.load %arg6[%c0_15, %c0_16] : memref<32x128xf32, #tpu.memory_space<vmem>>, vector<32x128xf32>
    tpu.vector_store %arg6[%c0_15, %c0_16], %31 {strides = array<i32>} : memref<32x128xf32, #tpu.memory_space<vmem>>, vector<32x128xf32>,
    return
  }
  func.func @transform_0(%arg0: i32) -> (i32, i32) {
    %c0_i32 = arith.constant 0 : i32
    %c0_i32_0 = arith.constant 0 : i32
    return %arg0, %c0_i32 : i32, i32
  }
  func.func @transform_1(%arg0: i32) -> (i32, i32) {
    %c0_i32 = arith.constant 0 : i32
    %c0_i32_0 = arith.constant 0 : i32
    %c0_i32_1 = arith.constant 0 : i32
    return %c0_i32, %c0_i32_0 : i32, i32
  }
  func.func @transform_2(%arg0: i32) -> (i32, i32) {
    %c0_i32 = arith.constant 0 : i32
    %c0_i32_0 = arith.constant 0 : i32
    %c0_i32_1 = arith.constant 0 : i32
    return %c0_i32, %c0_i32_0 : i32, i32
  }
  func.func @transform_3(%arg0: i32) -> (i32, i32) {
    %c0_i32 = arith.constant 0 : i32
    %c0_i32_0 = arith.constant 0 : i32
    %c0_i32_1 = arith.constant 0 : i32
    return %c0_i32, %c0_i32_0 : i32, i32
  }
  func.func @transform_4(%arg0: i32) -> (i32, i32) {
    %c0_i32 = arith.constant 0 : i32
    %c0_i32_0 = arith.constant 0 : i32
    %c0_i32_1 = arith.constant 0 : i32
    return %c0_i32, %c0_i32_0 : i32, i32
  }
  func.func @transform_5(%arg0: i32) -> (i32, i32) {
    %c0_i32 = arith.constant 0 : i32
    %c0_i32_0 = arith.constant 0 : i32
    return %arg0, %c0_i32 : i32, i32
  }
}

</mosaic_0001>

<bundles_post_ra>
// kernel: tpu_custom_call.1
= control target key start
LH: loop header
LB: loop body
LE: loop exit
PB: predicated region body
PF: predicated region fallthrough
CT: control target
= control target key end

     0   :  { %10 = vsyncpa [#allocation3], 0  ;;  %s476_s0 = inlined_call_operand.hbm [shape: f32[32,64], index: 0, kind: input, shape index: {}]   ;;  %s477_s1 = inlined_call_operand.hbm [shape: f32[64,128], index: 1, kind: input, shape index: {}]   ;;  %s478_s2 = inlined_call_operand.vmem [shape: f32[1,128], index: 2, kind: input, shape index: {}]   ;;  %s479_s3 = inlined_call_operand.vmem [shape: f32[1,128], index: 3, kind: input, shape index: {}]   ;;  %s480_s4 = inlined_call_operand.vmem [shape: f32[1,128], index: 4, kind: input, shape index: {}]   ;;  %s481_s5 = inlined_call_operand.hbm [shape: f32[32,128], index: 5, kind: output, shape index: {}]  }
   0x1   :  { %11 = vsyncpa [#allocation6], 0 }
   0x2   :  { %12 = vsyncpa [#allocation4], 0  ;;  %s402_s18 = smov [#allocation2]  }
   0x3   :  { %s18_s19 = sshll.u32 %s402_s18, 4  ;;  %s19_s19 = int_to_ptr.vmem [resolvable:$true] %s18_s19 }
   0x4   :  { %s344_s20 = scalar_lea.vmem %s19_s19, 512  ;;  %p349_p1 = scmp.lt.s32.totalorder %s19_s19, %s19_s19 }
   0x5   :  { %p345_p0 = scmp.ne.s32.totalorder %s19_s19, %s344_s20  ;;  %p350_p2 = scmp.lt.s32.totalorder %s344_s20, %s344_s20 }
   0x7   :  { %p351_p3 = por %p350_p2, %p349_p1 }
   0x9   :  { %p352_p4 = pnand %p351_p3, %p345_p0 }
   0xb   :  { %355 = shalt.err (!%p352_p4)
}
   0xc   :  { %s403_s21 = smov 128   ;;  %s404_s22 = smov 8  }
   0xd   :  { %24 = dma.hbm_to_vmem [thread:$0]  %s476_s0, 512, %s19_s19, [#allocation3], %s403_s21, %s403_s21, %s404_s22  }
   0xe   :  { %s405_s25 = smov [#allocation5]  }
   0xf   :  { %s30_s26 = sshll.u32 %s405_s25, 4  ;;  %s31_s26 = int_to_ptr.vmem [resolvable:$true] %s30_s26 }
  0x10   :  { %s364_s27 = scalar_lea.vmem %s31_s26, 1024  ;;  %p369_p6 = scmp.lt.s32.totalorder %s31_s26, %s31_s26 }
  0x11   :  { %p365_p5 = scmp.ne.s32.totalorder %s31_s26, %s364_s27  ;;  %p370_p7 = scmp.lt.s32.totalorder %s364_s27, %s364_s27 }
  0x13   :  { %p371_p8 = por %p370_p7, %p369_p6 }
  0x15   :  { %p372_p9 = pnand %p371_p8, %p365_p5 }
  0x17   :  { %375 = shalt.err (!%p372_p9)
}
  0x18   :  { %36 = dma.hbm_to_vmem [thread:$0]  %s477_s1, 1024, %s31_s26, [#allocation6], %s403_s21, %s403_s21, %s404_s22  }
  0x19   :  { %396 = dma.done.wait [#allocation3], 512  }
  0x1a   :  { %397 = vsyncadd [#allocation3], 4294966784 }
  0x1b   :  { %398 = dma.done.wait [#allocation6], 1024  }
  0x1c   :  { %399 = vsyncadd [#allocation6], 4294966272  ;;  %v60_v0 = vld [vmem:[#allocation5 + $0x38] sm:$0xff]  ;;  %v59_v1 = vld [vmem:[#allocation5 + $0x30] sm:$0xff]  ;;  %vm68_vm0 = vcmask 523264  }
  0x1d   :  { %285 = vmatprep.subr.mxu0 %v60_v0  ;;  %307 = vmatprep.subr.mxu1 %v60_v0  ;;  %v58_v2 = vld [vmem:[#allocation5 + $0x28] sm:$0xff]  ;;  %v57_v3 = vld [vmem:[#allocation5 + $0x20] sm:$0xff]  ;;  %v56_v4 = vld [vmem:[#allocation5 + $0x18] sm:$0xff] }
  0x1e   :  { %286 = vmatpush3.msra.mxu0 %v60_v0  ;;  %315 = vmatpush3.msra.mxu1 %v60_v0  ;;  %v55_v5 = vld [vmem:[#allocation5 + $0x10] sm:$0xff]  ;;  %v54_v6 = vld [vmem:[#allocation5 + $0x8] sm:$0xff]  ;;  %v53_v7 = vld [vmem:[#allocation5] sm:$0xff] }
  0x1f   :  { %287 = vmatprep.subr.mxu0 %v59_v1  ;;  %308 = vmatprep.subr.mxu1 %v59_v1  ;;  %v49_v8 = vld [vmem:[#allocation2] sm:$0xff]  ;;  %v51_v9 = vld [vmem:[#allocation2 + $0x10] sm:$0xff]  ;;  %v50_v10 = vld [vmem:[#allocation2 + $0x8] sm:$0xff] }
  0x20   :  { %288 = vmatpush3.msra.mxu0 %v59_v1  ;;  %316 = vmatpush3.msra.mxu1 %v59_v1  ;;  %v52_v11 = vld [vmem:[#allocation2 + $0x18] sm:$0xff]  ;;  %v266_v12 = vld [vmem:[%s478_s2] ss:$0 sm:$0xff] }
  0x21   :  { %289 = vmatprep.subr.mxu0 %v58_v2  ;;  %309 = vmatprep.subr.mxu1 %v58_v2  ;;  %v271_v60 = vld [vmem:[%s479_s3] ss:$0 sm:$0xff]  ;;  %s406_s3 = smov [#allocation7]  }
  0x22   :  { %290 = vmatpush3.msra.mxu0 %v58_v2  ;;  %317 = vmatpush3.msra.mxu1 %v58_v2  ;;  %v272_v0 = vld [vmem:[%s480_s4] ss:$0 sm:$0xff]  ;;  %s253_s8 = sshll.u32 %s406_s3, 4  ;;  %s254_s8 = int_to_ptr.vmem [resolvable:$true] %s253_s8 }
  0x23   :  { %291 = vmatprep.subr.mxu0 %v57_v3  ;;  %310 = vmatprep.subr.mxu1 %v57_v3  ;;  %s376_s4 = scalar_lea.vmem %s254_s8, 512  ;;  %p381_p11 = scmp.lt.s32.totalorder %s254_s8, %s254_s8 }
  0x24   :  { %292 = vmatpush3.msra.mxu0 %v57_v3  ;;  %318 = vmatpush3.msra.mxu1 %v57_v3  ;;  %p377_p10 = scmp.ne.s32.totalorder %s254_s8, %s376_s4  ;;  %p382_p12 = scmp.lt.s32.totalorder %s376_s4, %s376_s4 }
  0x25   :  { %293 = vmatprep.subr.mxu0 %v56_v4  ;;  %311 = vmatprep.subr.mxu1 %v56_v4 }
  0x26   :  { %294 = vmatpush3.msra.mxu0 %v56_v4  ;;  %319 = vmatpush3.msra.mxu1 %v56_v4  ;;  %p383_p13 = por %p382_p12, %p381_p11 }
  0x27   :  { %295 = vmatprep.subr.mxu0 %v55_v5  ;;  %312 = vmatprep.subr.mxu1 %v55_v5 }
  0x28   :  { %296 = vmatpush3.msra.mxu0 %v55_v5  ;;  %320 = vmatpush3.msra.mxu1 %v55_v5  ;;  %p384_p0 = pnand %p383_p13, %p377_p10 }
  0x29   :  { %297 = vmatprep.subr.mxu0 %v54_v6  ;;  %313 = vmatprep.subr.mxu1 %v54_v6 }
  0x2a   :  { %298 = vmatpush3.msra.mxu0 %v54_v6  ;;  %321 = vmatpush3.msra.mxu1 %v54_v6 }
  0x2b   :  { %299 = vmatprep.subr.mxu0 %v53_v7  ;;  %314 = vmatprep.subr.mxu1 %v53_v7 }
  0x2c   :  { %300 = vmatpush3.msra.mxu0 %v53_v7  ;;  %322 = vmatpush3.msra.mxu1 %v53_v7 }
  0x2d   :  { %301 = vmatprep.mubr.msk.f32.mxu0 %vm68_vm0, %v49_v8  ;;  %304 = vmatprep.mubr.msk.f32.mxu1 %vm68_vm0, %v51_v9 }
  0x2e   :  { %302 = vmatmul.mubr.msk.f32.vlgmr.msra.gmra.mxu0 %vm68_vm0, %v50_v10  ;;  %305 = vmatmul.mubr.msk.f32.vlgmr.msra.gmra.mxu1 %vm68_vm0, %v52_v11 }
  0xee   :  { %v303_v13 = vpop.f32.mrf.mxu0  ;;  %v306_v14 = vpop.f32.mrf.mxu1 }
  0xef   :  { %v153_v15 = vadd.f32 %v303_v13, %v266_v12  ;;  %v452_v16 = vadd.f32 %v306_v14, %v266_v12 }
  0xf0   :  { %v147_v17 = vpop.f32.mrf.mxu0  ;;  %v157_v18 = vpop.f32.mrf.mxu1 }
  0xf1   :  { %172 = vadd.xlane.f32.xlu1 %v452_v16  ;;  %168 = vadd.xlane.f32.xlu0 %v153_v15  ;;  %v148_v19 = vadd.f32 %v266_v12, %v147_v17  ;;  %v455_v20 = vadd.f32 %v266_v12, %v157_v18  ;;  %v175_v21 = vmul.f32 %v153_v15, %v153_v15 }
  0xf2   :  { %v177_v23 = vmul.f32 %v452_v16, %v452_v16 }
  0xf3   :  { %v174_v22 = vmul.f32 %v148_v19, %v148_v19  ;;  %v176_v24 = vmul.f32 %v455_v20, %v455_v20 }
  0xf5   :  { %170 = vadd.xlane.f32.xlu1 %v455_v20  ;;  %166 = vadd.xlane.f32.xlu0 %v148_v19 }
  0xf9   :  { %180 = vadd.xlane.f32.xlu1 %v175_v21  ;;  %178 = vadd.xlane.f32.xlu0 %v174_v22 }
  0xfd   :  { %184 = vadd.xlane.f32.xlu1 %v177_v23  ;;  %182 = vadd.xlane.f32.xlu0 %v176_v24 }
 0x17a   :  { %v173_v25 = vpop.xlane.xlu1 %172  ;;  %v169_v26 = vpop.xlane.xlu0 %168 }
 0x17b   :  { %v187_v29 = vmul.f32 0.0078125, %v169_v26  ;;  %v189_v31 = vmul.f32 0.0078125, %v173_v25 }
 0x17d   :  { %v195_v35 = vmul.f32 %v187_v29, %v187_v29  ;;  %v197_v41 = vmul.f32 %v189_v31, %v189_v31  ;;  %v207_v57 = vsub.f32 %v153_v15, %v187_v29  ;;  %v209_v1 = vsub.f32 %v452_v16, %v189_v31 }
 0x17e   :  { %v171_v27 = vpop.xlane.xlu1 %170  ;;  %v167_v28 = vpop.xlane.xlu0 %166 }
 0x17f   :  { %v186_v30 = vmul.f32 0.0078125, %v167_v28  ;;  %v188_v32 = vmul.f32 0.0078125, %v171_v27 }
 0x181   :  { %v194_v36 = vmul.f32 %v186_v30, %v186_v30  ;;  %v196_v42 = vmul.f32 %v188_v32, %v188_v32  ;;  %v206_v59 = vsub.f32 %v148_v19, %v186_v30  ;;  %v208_v4 = vsub.f32 %v455_v20, %v188_v32 }
 0x182   :  { %v181_v33 = vpop.xlane.xlu1 %180  ;;  %v179_v34 = vpop.xlane.xlu0 %178 }
 0x183   :  { %v191_v37 = vmul.f32 0.0078125, %v181_v33  ;;  %v190_v38 = vmul.f32 0.0078125, %v179_v34 }
 0x185   :  { %v199_v39 = vsub.f32 %v191_v37, %v195_v35  ;;  %v198_v40 = vsub.f32 %v190_v38, %v194_v36 }
 0x186   :  { %v185_v43 = vpop.xlane.xlu1 %184  ;;  %v183_v44 = vpop.xlane.xlu0 %182 }
 0x187   :  { %v203_v45 = vmax.f32 %v199_v39, 0.0  ;;  %v202_v46 = vmax.f32 %v198_v40, 0.0  ;;  %v193_v47 = vmul.f32 0.0078125, %v185_v43  ;;  %v192_v48 = vmul.f32 0.0078125, %v183_v44 }
 0x189   :  { %v211_v49 = vadd.f32 1e-05, %v203_v45  ;;  %v210_v50 = vadd.f32 1e-05, %v202_v46  ;;  %v201_v51 = vsub.f32 %v193_v47, %v197_v41  ;;  %v200_v52 = vsub.f32 %v192_v48, %v196_v42 }
 0x18b   :  { %328 = vrsqrt.f32 %v211_v49  ;;  %v205_v53 = vmax.f32 %v201_v51, 0.0  ;;  %v204_v54 = vmax.f32 %v200_v52, 0.0 }
 0x18c   :  { %330 = vrsqrt.f32 %v210_v50 }
 0x18d   :  { %v213_v55 = vadd.f32 1e-05, %v205_v53  ;;  %v212_v56 = vadd.f32 1e-05, %v204_v54 }
 0x18f   :  { %332 = vrsqrt.f32 %v213_v55 }
 0x190   :  { %334 = vrsqrt.f32 %v212_v56 }
 0x198   :  { %v329_v58 = vpop.eup %328 }
 0x199   :  { %v331_v61 = vpop.eup %330  ;;  %v219_v62 = vmul.f32 %v329_v58, %v207_v57 }
 0x19a   :  { %v218_v63 = vmul.f32 %v331_v61, %v206_v59 }
 0x19b   :  { %v230_v2 = vmul.f32 %v271_v60, %v219_v62 }
 0x19c   :  { %v333_v3 = vpop.eup %332  ;;  %v229_v5 = vmul.f32 %v271_v60, %v218_v63 }
 0x19d   :  { %v335_v6 = vpop.eup %334  ;;  %v221_v7 = vmul.f32 %v333_v3, %v209_v1  ;;  %v241_v8 = vadd.f32 %v272_v0, %v230_v2 }
 0x19e   :  { %v220_v9 = vmul.f32 %v335_v6, %v208_v4  ;;  %v240_v10 = vadd.f32 %v272_v0, %v229_v5 }
 0x19f   :  { %v232_v11 = vmul.f32 %v271_v60, %v221_v7  ;;  %245 = vst [vmem:[#allocation7 + $0x8] sm:$0xff] %v241_v8 }
 0x1a0   :  { %v231_v12 = vmul.f32 %v271_v60, %v220_v9  ;;  %244 = vst [vmem:[#allocation7] sm:$0xff] %v240_v10 }
 0x1a1   :  { %v243_v13 = vadd.f32 %v272_v0, %v232_v11 }
 0x1a2   :  { %v242_v14 = vadd.f32 %v272_v0, %v231_v12 }
 0x1a3   :  { %247 = vst [vmem:[#allocation7 + $0x18] sm:$0xff] %v243_v13 }
 0x1a4   :  { %246 = vst [vmem:[#allocation7 + $0x10] sm:$0xff] %v242_v14 }
 0x1a5   :  { %387 = shalt.err (!%p384_p0)
}
 0x1a6   :  { %259 = dma.vmem_to_hbm [thread:$0]  %s254_s8, 512, %s481_s5, [#allocation4], %s403_s21, %s403_s21, %s404_s22  }
 0x1a7   :  { %400 = dma.done.wait [#allocation4], 512  }
 0x1a8   :  { %401 = vsyncadd [#allocation4], 4294966784 }
 0x1a9   :  { %263 = vsyncpa [#allocation3], 1 }
 0x1aa   :  { %264 = vsyncpa [#allocation6], 1 }
 0x1ab   :  { %265 = vsyncpa [#allocation4], 1 }

// kernel: tpu_custom_call.1
= control target key start
LH: loop header
LB: loop body
LE: loop exit
PB: predicated region body
PF: predicated region fallthrough
CT: control target
= control target key end

     0   :  { %10 = vsyncpa [#allocation3], 0  ;;  %s476_s0 = inlined_call_operand.hbm [shape: f32[32,64], index: 0, kind: input, shape index: {}]   ;;  %s477_s1 = inlined_call_operand.hbm [shape: f32[64,128], index: 1, kind: input, shape index: {}]   ;;  %s478_s2 = inlined_call_operand.vmem [shape: f32[1,128], index: 2, kind: input, shape index: {}]   ;;  %s479_s3 = inlined_call_operand.vmem [shape: f32[1,128], index: 3, kind: input, shape index: {}]   ;;  %s480_s4 = inlined_call_operand.vmem [shape: f32[1,128], index: 4, kind: input, shape index: {}]   ;;  %s481_s5 = inlined_call_operand.hbm [shape: f32[32,128], index: 5, kind: output, shape index: {}]  }
   0x1   :  { %11 = vsyncpa [#allocation6], 0 }
   0x2   :  { %12 = vsyncpa [#allocation4], 0  ;;  %s402_s18 = smov [#allocation2]  }
   0x3   :  { %s18_s19 = sshll.u32 %s402_s18, 4  ;;  %s19_s19 = int_to_ptr.vmem [resolvable:$true] %s18_s19 }
   0x4   :  { %s344_s20 = scalar_lea.vmem %s19_s19, 512  ;;  %p349_p1 = scmp.lt.s32.totalorder %s19_s19, %s19_s19 }
   0x5   :  { %p345_p0 = scmp.ne.s32.totalorder %s19_s19, %s344_s20  ;;  %p350_p2 = scmp.lt.s32.totalorder %s344_s20, %s344_s20 }
   0x7   :  { %p351_p3 = por %p350_p2, %p349_p1 }
   0x9   :  { %p352_p4 = pnand %p351_p3, %p345_p0 }
   0xb   :  { %355 = shalt.err (!%p352_p4)
}
   0xc   :  { %s403_s21 = smov 128   ;;  %s404_s22 = smov 8  }
   0xd   :  { %24 = dma.hbm_to_vmem [thread:$0]  %s476_s0, 512, %s19_s19, [#allocation3], %s403_s21, %s403_s21, %s404_s22  }
   0xe   :  { %s405_s25 = smov [#allocation5]  }
   0xf   :  { %s30_s26 = sshll.u32 %s405_s25, 4  ;;  %s31_s26 = int_to_ptr.vmem [resolvable:$true] %s30_s26 }
  0x10   :  { %s364_s27 = scalar_lea.vmem %s31_s26, 1024  ;;  %p369_p6 = scmp.lt.s32.totalorder %s31_s26, %s31_s26 }
  0x11   :  { %p365_p5 = scmp.ne.s32.totalorder %s31_s26, %s364_s27  ;;  %p370_p7 = scmp.lt.s32.totalorder %s364_s27, %s364_s27 }
  0x13   :  { %p371_p8 = por %p370_p7, %p369_p6 }
  0x15   :  { %p372_p9 = pnand %p371_p8, %p365_p5 }
  0x17   :  { %375 = shalt.err (!%p372_p9)
}
  0x18   :  { %36 = dma.hbm_to_vmem [thread:$0]  %s477_s1, 1024, %s31_s26, [#allocation6], %s403_s21, %s403_s21, %s404_s22  }
  0x19   :  { %396 = dma.done.wait [#allocation3], 512  }
  0x1a   :  { %397 = vsyncadd [#allocation3], 4294966784 }
  0x1b   :  { %398 = dma.done.wait [#allocation6], 1024  }
  0x1c   :  { %399 = vsyncadd [#allocation6], 4294966272  ;;  %v60_v0 = vld [vmem:[#allocation5 + $0x38] sm:$0xff]  ;;  %v59_v1 = vld [vmem:[#allocation5 + $0x30] sm:$0xff]  ;;  %vm68_vm0 = vcmask 523264  }
  0x1d   :  { %285 = vmatprep.subr.mxu0 %v60_v0  ;;  %307 = vmatprep.subr.mxu1 %v60_v0  ;;  %v58_v2 = vld [vmem:[#allocation5 + $0x28] sm:$0xff]  ;;  %v57_v3 = vld [vmem:[#allocation5 + $0x20] sm:$0xff]  ;;  %v56_v4 = vld [vmem:[#allocation5 + $0x18] sm:$0xff] }
  0x1e   :  { %286 = vmatpush3.msra.mxu0 %v60_v0  ;;  %315 = vmatpush3.msra.mxu1 %v60_v0  ;;  %v55_v5 = vld [vmem:[#allocation5 + $0x10] sm:$0xff]  ;;  %v54_v6 = vld [vmem:[#allocation5 + $0x8] sm:$0xff]  ;;  %v53_v7 = vld [vmem:[#allocation5] sm:$0xff] }
  0x1f   :  { %287 = vmatprep.subr.mxu0 %v59_v1  ;;  %308 = vmatprep.subr.mxu1 %v59_v1  ;;  %v49_v8 = vld [vmem:[#allocation2] sm:$0xff]  ;;  %v51_v9 = vld [vmem:[#allocation2 + $0x10] sm:$0xff]  ;;  %v50_v10 = vld [vmem:[#allocation2 + $0x8] sm:$0xff] }
  0x20   :  { %288 = vmatpush3.msra.mxu0 %v59_v1  ;;  %316 = vmatpush3.msra.mxu1 %v59_v1  ;;  %v52_v11 = vld [vmem:[#allocation2 + $0x18] sm:$0xff]  ;;  %v266_v12 = vld [vmem:[%s478_s2] ss:$0 sm:$0xff] }
  0x21   :  { %289 = vmatprep.subr.mxu0 %v58_v2  ;;  %309 = vmatprep.subr.mxu1 %v58_v2  ;;  %v271_v60 = vld [vmem:[%s479_s3] ss:$0 sm:$0xff]  ;;  %s406_s3 = smov [#allocation7]  }
  0x22   :  { %290 = vmatpush3.msra.mxu0 %v58_v2  ;;  %317 = vmatpush3.msra.mxu1 %v58_v2  ;;  %v272_v0 = vld [vmem:[%s480_s4] ss:$0 sm:$0xff]  ;;  %s253_s8 = sshll.u32 %s406_s3, 4  ;;  %s254_s8 = int_to_ptr.vmem [resolvable:$true] %s253_s8 }
  0x23   :  { %291 = vmatprep.subr.mxu0 %v57_v3  ;;  %310 = vmatprep.subr.mxu1 %v57_v3  ;;  %s376_s4 = scalar_lea.vmem %s254_s8, 512  ;;  %p381_p11 = scmp.lt.s32.totalorder %s254_s8, %s254_s8 }
  0x24   :  { %292 = vmatpush3.msra.mxu0 %v57_v3  ;;  %318 = vmatpush3.msra.mxu1 %v57_v3  ;;  %p377_p10 = scmp.ne.s32.totalorder %s254_s8, %s376_s4  ;;  %p382_p12 = scmp.lt.s32.totalorder %s376_s4, %s376_s4 }
  0x25   :  { %293 = vmatprep.subr.mxu0 %v56_v4  ;;  %311 = vmatprep.subr.mxu1 %v56_v4 }
  0x26   :  { %294 = vmatpush3.msra.mxu0 %v56_v4  ;;  %319 = vmatpush3.msra.mxu1 %v56_v4  ;;  %p383_p13 = por %p382_p12, %p381_p11 }
  0x27   :  { %295 = vmatprep.subr.mxu0 %v55_v5  ;;  %312 = vmatprep.subr.mxu1 %v55_v5 }
  0x28   :  { %296 = vmatpush3.msra.mxu0 %v55_v5  ;;  %320 = vmatpush3.msra.mxu1 %v55_v5  ;;  %p384_p0 = pnand %p383_p13, %p377_p10 }
  0x29   :  { %297 = vmatprep.subr.mxu0 %v54_v6  ;;  %313 = vmatprep.subr.mxu1 %v54_v6 }
  0x2a   :  { %298 = vmatpush3.msra.mxu0 %v54_v6  ;;  %321 = vmatpush3.msra.mxu1 %v54_v6 }
  0x2b   :  { %299 = vmatprep.subr.mxu0 %v53_v7  ;;  %314 = vmatprep.subr.mxu1 %v53_v7 }
  0x2c   :  { %300 = vmatpush3.msra.mxu0 %v53_v7  ;;  %322 = vmatpush3.msra.mxu1 %v53_v7 }
  0x2d   :  { %301 = vmatprep.mubr.msk.f32.mxu0 %vm68_vm0, %v49_v8  ;;  %304 = vmatprep.mubr.msk.f32.mxu1 %vm68_vm0, %v51_v9 }
  0x2e   :  { %302 = vmatmul.mubr.msk.f32.vlgmr.msra.gmra.mxu0 %vm68_vm0, %v50_v10  ;;  %305 = vmatmul.mubr.msk.f32.vlgmr.msra.gmra.mxu1 %vm68_vm0, %v52_v11 }
  0xee   :  { %v303_v13 = vpop.f32.mrf.mxu0  ;;  %v306_v14 = vpop.f32.mrf.mxu1 }
  0xef   :  { %v153_v15 = vadd.f32 %v303_v13, %v266_v12  ;;  %v452_v16 = vadd.f32 %v306_v14, %v266_v12 }
  0xf0   :  { %v147_v17 = vpop.f32.mrf.mxu0  ;;  %v157_v18 = vpop.f32.mrf.mxu1 }
  0xf1   :  { %172 = vadd.xlane.f32.xlu1 %v452_v16  ;;  %168 = vadd.xlane.f32.xlu0 %v153_v15  ;;  %v148_v19 = vadd.f32 %v266_v12, %v147_v17  ;;  %v455_v20 = vadd.f32 %v266_v12, %v157_v18  ;;  %v175_v21 = vmul.f32 %v153_v15, %v153_v15 }
  0xf2   :  { %v177_v23 = vmul.f32 %v452_v16, %v452_v16 }
  0xf3   :  { %v174_v22 = vmul.f32 %v148_v19, %v148_v19  ;;  %v176_v24 = vmul.f32 %v455_v20, %v455_v20 }
  0xf5   :  { %170 = vadd.xlane.f32.xlu1 %v455_v20  ;;  %166 = vadd.xlane.f32.xlu0 %v148_v19 }
  0xf9   :  { %180 = vadd.xlane.f32.xlu1 %v175_v21  ;;  %178 = vadd.xlane.f32.xlu0 %v174_v22 }
  0xfd   :  { %184 = vadd.xlane.f32.xlu1 %v177_v23  ;;  %182 = vadd.xlane.f32.xlu0 %v176_v24 }
 0x17a   :  { %v173_v25 = vpop.xlane.xlu1 %172  ;;  %v169_v26 = vpop.xlane.xlu0 %168 }
 0x17b   :  { %v187_v29 = vmul.f32 0.0078125, %v169_v26  ;;  %v189_v31 = vmul.f32 0.0078125, %v173_v25 }
 0x17d   :  { %v195_v35 = vmul.f32 %v187_v29, %v187_v29  ;;  %v197_v41 = vmul.f32 %v189_v31, %v189_v31  ;;  %v207_v57 = vsub.f32 %v153_v15, %v187_v29  ;;  %v209_v1 = vsub.f32 %v452_v16, %v189_v31 }
 0x17e   :  { %v171_v27 = vpop.xlane.xlu1 %170  ;;  %v167_v28 = vpop.xlane.xlu0 %166 }
 0x17f   :  { %v186_v30 = vmul.f32 0.0078125, %v167_v28  ;;  %v188_v32 = vmul.f32 0.0078125, %v171_v27 }
 0x181   :  { %v194_v36 = vmul.f32 %v186_v30, %v186_v30  ;;  %v196_v42 = vmul.f32 %v188_v32, %v188_v32  ;;  %v206_v59 = vsub.f32 %v148_v19, %v186_v30  ;;  %v208_v4 = vsub.f32 %v455_v20, %v188_v32 }
 0x182   :  { %v181_v33 = vpop.xlane.xlu1 %180  ;;  %v179_v34 = vpop.xlane.xlu0 %178 }
 0x183   :  { %v191_v37 = vmul.f32 0.0078125, %v181_v33  ;;  %v190_v38 = vmul.f32 0.0078125, %v179_v34 }
 0x185   :  { %v199_v39 = vsub.f32 %v191_v37, %v195_v35  ;;  %v198_v40 = vsub.f32 %v190_v38, %v194_v36 }
 0x186   :  { %v185_v43 = vpop.xlane.xlu1 %184  ;;  %v183_v44 = vpop.xlane.xlu0 %182 }
 0x187   :  { %v203_v45 = vmax.f32 %v199_v39, 0.0  ;;  %v202_v46 = vmax.f32 %v198_v40, 0.0  ;;  %v193_v47 = vmul.f32 0.0078125, %v185_v43  ;;  %v192_v48 = vmul.f32 0.0078125, %v183_v44 }
 0x189   :  { %v211_v49 = vadd.f32 1e-05, %v203_v45  ;;  %v210_v50 = vadd.f32 1e-05, %v202_v46  ;;  %v201_v51 = vsub.f32 %v193_v47, %v197_v41  ;;  %v200_v52 = vsub.f32 %v192_v48, %v196_v42 }
 0x18b   :  { %328 = vrsqrt.f32 %v211_v49  ;;  %v205_v53 = vmax.f32 %v201_v51, 0.0  ;;  %v204_v54 = vmax.f32 %v200_v52, 0.0 }
 0x18c   :  { %330 = vrsqrt.f32 %v210_v50 }
 0x18d   :  { %v213_v55 = vadd.f32 1e-05, %v205_v53  ;;  %v212_v56 = vadd.f32 1e-05, %v204_v54 }
 0x18f   :  { %332 = vrsqrt.f32 %v213_v55 }
 0x190   :  { %334 = vrsqrt.f32 %v212_v56 }
 0x198   :  { %v329_v58 = vpop.eup %328 }
 0x199   :  { %v331_v61 = vpop.eup %330  ;;  %v219_v62 = vmul.f32 %v329_v58, %v207_v57 }
 0x19a   :  { %v218_v63 = vmul.f32 %v331_v61, %v206_v59 }
 0x19b   :  { %v230_v2 = vmul.f32 %v271_v60, %v219_v62 }
 0x19c   :  { %v333_v3 = vpop.eup %332  ;;  %v229_v5 = vmul.f32 %v271_v60, %v218_v63 }
 0x19d   :  { %v335_v6 = vpop.eup %334  ;;  %v221_v7 = vmul.f32 %v333_v3, %v209_v1  ;;  %v241_v8 = vadd.f32 %v272_v0, %v230_v2 }
 0x19e   :  { %v220_v9 = vmul.f32 %v335_v6, %v208_v4  ;;  %v240_v10 = vadd.f32 %v272_v0, %v229_v5 }
 0x19f   :  { %v232_v11 = vmul.f32 %v271_v60, %v221_v7  ;;  %245 = vst [vmem:[#allocation7 + $0x8] sm:$0xff] %v241_v8 }
 0x1a0   :  { %v231_v12 = vmul.f32 %v271_v60, %v220_v9  ;;  %244 = vst [vmem:[#allocation7] sm:$0xff] %v240_v10 }
 0x1a1   :  { %v243_v13 = vadd.f32 %v272_v0, %v232_v11 }
 0x1a2   :  { %v242_v14 = vadd.f32 %v272_v0, %v231_v12 }
 0x1a3   :  { %247 = vst [vmem:[#allocation7 + $0x18] sm:$0xff] %v243_v13 }
 0x1a4   :  { %246 = vst [vmem:[#allocation7 + $0x10] sm:$0xff] %v242_v14 }
 0x1a5   :  { %387 = shalt.err (!%p384_p0)
}
 0x1a6   :  { %259 = dma.vmem_to_hbm [thread:$0]  %s254_s8, 512, %s481_s5, [#allocation4], %s403_s21, %s403_s21, %s404_s22  }
 0x1a7   :  { %400 = dma.done.wait [#allocation4], 512  }
 0x1a8   :  { %401 = vsyncadd [#allocation4], 4294966784 }
 0x1a9   :  { %263 = vsyncpa [#allocation3], 1 }
 0x1aa   :  { %264 = vsyncpa [#allocation6], 1 }
 0x1ab   :  { %265 = vsyncpa [#allocation4], 1 }

</bundles_post_ra>
